<compile_context>
chip_gen: v5e
topology: v5e:2x2
jax: 0.10.0
libtpu: 0.0.40
codegen_flags: <defaults>
</compile_context>

<pallas_src>
import functools

import jax
import jax.numpy as jnp
from jax.experimental import pallas as pl
from jax.experimental.pallas import tpu as pltpu


def _topk_mask_kernel(x_ref, o_ref, *, k: int):
    """Keep the k largest values of each row of the (TB, D) tile, zero the rest."""
    x = x_ref[...]                                   # (tb, d) tile
    xf = x.astype(jnp.float32)
    tb, d = xf.shape                                 # static at trace time
    lane = jax.lax.broadcasted_iota(jnp.int32, (tb, d), 1)
    neg_inf = jnp.float32(-jnp.inf)

    # avail marks entries not yet selected into the top-k set.
    avail = jnp.ones((tb, d), dtype=jnp.bool_)
    for _ in range(k):                               # k is small & static -> unrolled
        work = jnp.where(avail, xf, neg_inf)
        m = jnp.max(work, axis=-1, keepdims=True)                    # row max (XLU)
        is_m = jnp.logical_and(avail, work == m)
        # First occurrence of the max: exactly one element selected per row,
        # ties broken by lowest index (same x*gate values as torch.topk).
        first = jnp.min(jnp.where(is_m, lane, d), axis=-1, keepdims=True)
        sel = lane == first
        avail = jnp.logical_and(avail, jnp.logical_not(sel))

    gate = jnp.logical_not(avail)                    # exactly k ones per row
    o_ref[...] = x * gate.astype(x.dtype)


def topk_forward(x: jax.Array, k: int, *, target_block_bytes: int = 1 << 20) -> jax.Array:
    """out = x * gate, gate has 1s at the k largest entries along the last dim."""
    orig_shape = x.shape
    d = int(orig_shape[-1])
    if not (0 < k <= d):
        raise ValueError(f"k={k} must be in (0, {d}]")

    rows = 1
    for s in orig_shape[:-1]:
        rows *= int(s)
    x2 = x.reshape(rows, d)

    itemsize = jnp.dtype(x.dtype).itemsize
    sublane = {4: 8, 2: 16, 1: 32}.get(itemsize, 8)

    # Large, lane-dense row-slab blocks (~target_block_bytes each), full rows.
    tb = max(sublane, (target_block_bytes // max(1, d * itemsize)) // sublane * sublane)
    if tb >= rows:
        tb = rows                                    # single block; full extent is legal
    grid = (pl.cdiv(rows, tb),)                      # ragged last block handled by Pallas

    out2 = pl.pallas_call(
        functools.partial(_topk_mask_kernel, k=k),
        out_shape=jax.ShapeDtypeStruct((rows, d), x.dtype),
        grid=grid,
        in_specs=[pl.BlockSpec((tb, d), lambda i: (i, 0))],
        out_specs=pl.BlockSpec((tb, d), lambda i: (i, 0)),
        compiler_params=pltpu.CompilerParams(
            dimension_semantics=("parallel",),
            vmem_limit_bytes=32 << 20,
        ),
    )(x2)
    return out2.reshape(orig_shape)


if __name__ == "__main__":
    K = 4                                            # TopK(k=4)
    key = jax.random.PRNGKey(0)
    # Small but lane-dense shapes: batch=2, seq=8, hidden=256 -> 16 rows of 256.
    x = jax.random.normal(key, (2, 8, 256), dtype=jnp.float32)

    out = jax.block_until_ready(topk_forward(x, K))

    # Pure-JAX reference with the same semantics as the torch module.
    _, idx = jax.lax.top_k(x, K)
    gate = jax.nn.one_hot(idx, x.shape[-1], dtype=x.dtype).sum(axis=-2)
    ref = x * gate

    assert out.shape == x.shape and out.dtype == x.dtype
    assert jnp.allclose(out, ref), "mismatch vs reference top-k gating"
    kept = jnp.sum(out != 0, axis=-1)
    assert int(jnp.min(kept)) == K and int(jnp.max(kept)) == K

    print("KERNEL_OK")
</pallas_src>

<mosaic_0001>
module attributes {stable_mosaic.version = 11 : i64} {
  func.func @_topk_mask_kernel(%arg0: i32, %arg1: memref<16x256xf32, #tpu.memory_space<vmem>>, %arg2: memref<16x256xf32, #tpu.memory_space<vmem>>) attributes {dimension_semantics = [#tpu.dimension_semantics<parallel>], iteration_bounds = array<i64: 1>, scalar_prefetch = 0 : i64, scratch_operands = 0 : i64, tpu.core_type = #tpu.core_type<tc>, window_params = [{transform_indices = @transform_0, window_bounds = array<i64: 16, 256>}, {transform_indices = @transform_1, window_bounds = array<i64: 16, 256>}]} {
    %c0 = arith.constant 0 : index
    %c0_0 = arith.constant 0 : index
    %0 = vector.load %arg1[%c0, %c0_0] : memref<16x256xf32, #tpu.memory_space<vmem>>, vector<16x256xf32>
    %1 = tpu.iota {dimensions = array<i32: 1>} : vector<16x256xi32>
    %true = arith.constant true
    %2 = vector.broadcast %true : i1 to vector<16x256xi1>
    %cst = arith.constant 0xFF800000 : f32
    %3 = vector.broadcast %cst : f32 to vector<16x256xf32>
    %4 = arith.select %2, %0, %3 : vector<16x256xi1>, vector<16x256xf32>
    %cst_1 = arith.constant dense<0xFF800000> : vector<16xf32>
    %5 = vector.multi_reduction <maximumf>, %4, %cst_1 [1] : vector<16x256xf32> to vector<16xf32>
    %6 = vector.shape_cast %5 : vector<16xf32> to vector<16x1xf32>
    %7 = vector.broadcast %6 : vector<16x1xf32> to vector<16x256xf32>
    %8 = arith.cmpf oeq, %4, %7 : vector<16x256xf32>
    %9 = arith.andi %2, %8 : vector<16x256xi1>
    %c256_i32 = arith.constant 256 : i32
    %10 = vector.broadcast %c256_i32 : i32 to vector<16x256xi32>
    %11 = arith.select %9, %1, %10 : vector<16x256xi1>, vector<16x256xi32>
    %cst_2 = arith.constant dense<2147483647> : vector<16xi32>
    %12 = vector.multi_reduction <minsi>, %11, %cst_2 [1] : vector<16x256xi32> to vector<16xi32>
    %13 = vector.shape_cast %12 : vector<16xi32> to vector<16x1xi32>
    %14 = vector.broadcast %13 : vector<16x1xi32> to vector<16x256xi32>
    %15 = arith.cmpi eq, %1, %14 : vector<16x256xi32>
    %cst_3 = arith.constant dense<true> : vector<16x256xi1>
    %16 = arith.xori %15, %cst_3 : vector<16x256xi1>
    %17 = arith.andi %2, %16 : vector<16x256xi1>
    %cst_4 = arith.constant 0xFF800000 : f32
    %18 = vector.broadcast %cst_4 : f32 to vector<16x256xf32>
    %19 = arith.select %17, %0, %18 : vector<16x256xi1>, vector<16x256xf32>
    %cst_5 = arith.constant dense<0xFF800000> : vector<16xf32>
    %20 = vector.multi_reduction <maximumf>, %19, %cst_5 [1] : vector<16x256xf32> to vector<16xf32>
    %21 = vector.shape_cast %20 : vector<16xf32> to vector<16x1xf32>
    %22 = vector.broadcast %21 : vector<16x1xf32> to vector<16x256xf32>
    %23 = arith.cmpf oeq, %19, %22 : vector<16x256xf32>
    %24 = arith.andi %17, %23 : vector<16x256xi1>
    %c256_i32_6 = arith.constant 256 : i32
    %25 = vector.broadcast %c256_i32_6 : i32 to vector<16x256xi32>
    %26 = arith.select %24, %1, %25 : vector<16x256xi1>, vector<16x256xi32>
    %cst_7 = arith.constant dense<2147483647> : vector<16xi32>
    %27 = vector.multi_reduction <minsi>, %26, %cst_7 [1] : vector<16x256xi32> to vector<16xi32>
    %28 = vector.shape_cast %27 : vector<16xi32> to vector<16x1xi32>
    %29 = vector.broadcast %28 : vector<16x1xi32> to vector<16x256xi32>
    %30 = arith.cmpi eq, %1, %29 : vector<16x256xi32>
    %cst_8 = arith.constant dense<true> : vector<16x256xi1>
    %31 = arith.xori %30, %cst_8 : vector<16x256xi1>
    %32 = arith.andi %17, %31 : vector<16x256xi1>
    %cst_9 = arith.constant 0xFF800000 : f32
    %33 = vector.broadcast %cst_9 : f32 to vector<16x256xf32>
    %34 = arith.select %32, %0, %33 : vector<16x256xi1>, vector<16x256xf32>
    %cst_10 = arith.constant dense<0xFF800000> : vector<16xf32>
    %35 = vector.multi_reduction <maximumf>, %34, %cst_10 [1] : vector<16x256xf32> to vector<16xf32>
    %36 = vector.shape_cast %35 : vector<16xf32> to vector<16x1xf32>
    %37 = vector.broadcast %36 : vector<16x1xf32> to vector<16x256xf32>
    %38 = arith.cmpf oeq, %34, %37 : vector<16x256xf32>
    %39 = arith.andi %32, %38 : vector<16x256xi1>
    %c256_i32_11 = arith.constant 256 : i32
    %40 = vector.broadcast %c256_i32_11 : i32 to vector<16x256xi32>
    %41 = arith.select %39, %1, %40 : vector<16x256xi1>, vector<16x256xi32>
    %cst_12 = arith.constant dense<2147483647> : vector<16xi32>
    %42 = vector.multi_reduction <minsi>, %41, %cst_12 [1] : vector<16x256xi32> to vector<16xi32>
    %43 = vector.shape_cast %42 : vector<16xi32> to vector<16x1xi32>
    %44 = vector.broadcast %43 : vector<16x1xi32> to vector<16x256xi32>
    %45 = arith.cmpi eq, %1, %44 : vector<16x256xi32>
    %cst_13 = arith.constant dense<true> : vector<16x256xi1>
    %46 = arith.xori %45, %cst_13 : vector<16x256xi1>
    %47 = arith.andi %32, %46 : vector<16x256xi1>
    %cst_14 = arith.constant 0xFF800000 : f32
    %48 = vector.broadcast %cst_14 : f32 to vector<16x256xf32>
    %49 = arith.select %47, %0, %48 : vector<16x256xi1>, vector<16x256xf32>
    %cst_15 = arith.constant dense<0xFF800000> : vector<16xf32>
    %50 = vector.multi_reduction <maximumf>, %49, %cst_15 [1] : vector<16x256xf32> to vector<16xf32>
    %51 = vector.shape_cast %50 : vector<16xf32> to vector<16x1xf32>
    %52 = vector.broadcast %51 : vector<16x1xf32> to vector<16x256xf32>
    %53 = arith.cmpf oeq, %49, %52 : vector<16x256xf32>
    %54 = arith.andi %47, %53 : vector<16x256xi1>
    %c256_i32_16 = arith.constant 256 : i32
    %55 = vector.broadcast %c256_i32_16 : i32 to vector<16x256xi32>
    %56 = arith.select %54, %1, %55 : vector<16x256xi1>, vector<16x256xi32>
    %cst_17 = arith.constant dense<2147483647> : vector<16xi32>
    %57 = vector.multi_reduction <minsi>, %56, %cst_17 [1] : vector<16x256xi32> to vector<16xi32>
    %58 = vector.shape_cast %57 : vector<16xi32> to vector<16x1xi32>
    %59 = vector.broadcast %58 : vector<16x1xi32> to vector<16x256xi32>
    %60 = arith.cmpi eq, %1, %59 : vector<16x256xi32>
    %cst_18 = arith.constant dense<true> : vector<16x256xi1>
    %61 = arith.xori %60, %cst_18 : vector<16x256xi1>
    %62 = arith.andi %47, %61 : vector<16x256xi1>
    %cst_19 = arith.constant dense<true> : vector<16x256xi1>
    %63 = arith.xori %62, %cst_19 : vector<16x256xi1>
    %64 = arith.extui %63 : vector<16x256xi1> to vector<16x256xi32>
    %65 = arith.sitofp %64 : vector<16x256xi32> to vector<16x256xf32>
    %66 = arith.mulf %0, %65 : vector<16x256xf32>
    %c0_20 = arith.constant 0 : index
    %c0_21 = arith.constant 0 : index
    %67 = vector.load %arg2[%c0_20, %c0_21] : memref<16x256xf32, #tpu.memory_space<vmem>>, vector<16x256xf32>
    tpu.vector_store %arg2[%c0_20, %c0_21], %66 {strides = array<i32>} : memref<16x256xf32, #tpu.memory_space<vmem>>, vector<16x256xf32>,
    return
  }
  func.func @transform_0(%arg0: i32) -> (i32, i32) {
    %c0_i32 = arith.constant 0 : i32
    %c0_i32_0 = arith.constant 0 : i32
    return %arg0, %c0_i32 : i32, i32
  }
  func.func @transform_1(%arg0: i32) -> (i32, i32) {
    %c0_i32 = arith.constant 0 : i32
    %c0_i32_0 = arith.constant 0 : i32
    return %arg0, %c0_i32 : i32, i32
  }
}

</mosaic_0001>

<bundles_post_ra>
// kernel: tpu_custom_call.1
= control target key start
LH: loop header
LB: loop body
LE: loop exit
PB: predicated region body
PF: predicated region fallthrough
CT: control target
= control target key end

     0   :  { %6 = vsyncpa [#allocation3], 0  ;;  %s622_s0 = inlined_call_operand.hbm [shape: f32[16,256], index: 0, kind: input, shape index: {}]   ;;  %s623_s1 = inlined_call_operand.hbm [shape: f32[16,256], index: 1, kind: output, shape index: {}]  }
   0x1   :  { %7 = vsyncpa [#allocation4], 0  ;;  %s12_s8 = sshll.u32 %s622_s0, 4  ;;  %s385_s9 = smov [#allocation2]   ;;  %s13_s8 = int_to_ptr.hbm [resolvable:$true] %s12_s8 }
   0x2   :  { %s14_s10 = sshll.u32 %s385_s9, 4  ;;  %s386_s11 = smov 256   ;;  %s15_s10 = int_to_ptr.vmem [resolvable:$true] %s14_s10 }
   0x3   :  { %s387_s12 = smov 16  }
   0x4   :  { %20 = dma.hbm_to_vmem [thread:$0]  %s13_s8, 512, %s15_s10, [#allocation3], %s386_s11, %s386_s11, %s387_s12  }
   0x5   :  { %381 = dma.done.wait [#allocation3], 512  }
   0x6   :  { %382 = vsyncadd [#allocation3], 4294966784  ;;  %v407_v0 = vld [vmem:[#allocation2] sm:$0xff]  ;;  %v409_v1 = vld [vmem:[#allocation2 + $0x8] sm:$0xff]  ;;  %v29_v6 = vlaneseq  ;;  %vm388_vm10 = vmmov 1   ;;  %s390_s0 = smov [#allocation5]  }
   0x7   :  { %v32_v2 = vmax.f32 %v407_v0, %v409_v1  ;;  %v413_v3 = vld [vmem:[#allocation2 + $0x10] sm:$0xff]  ;;  %v415_v4 = vld [vmem:[#allocation2 + $0x18] sm:$0xff]  ;;  %s308_s13 = sshll.u32 %s390_s0, 4  ;;  %s310_s16 = sshll.u32 %s623_s1, 4  ;;  %s309_s13 = int_to_ptr.vmem [resolvable:$true] %s308_s13  ;;  %s311_s16 = int_to_ptr.hbm [resolvable:$true] %s310_s16 }
   0x8   :  { %v35_v5 = vmax.f32 %v413_v3, %v415_v4  ;;  %v419_v7 = vand.u32 127, %v29_v6 }
   0x9   :  { %33 = vmax.xlane.f32.xlu0 %v32_v2 }
   0xa   :  { %v422_v8 = vadd.s32 128, %v419_v7 }
  0x11   :  { %36 = vmax.xlane.f32.xlu0 %v35_v5 }
  0x7c   :  { %v34_v9 = vpop.xlane.xlu0 %33 }
  0x7d   :  { %vm38_vm0 = vcmp.eq.f32.partialorder %v407_v0, %v34_v9  ;;  %vm39_vm1 = vcmp.eq.f32.partialorder %v409_v1, %v34_v9 }
  0x7e   :  { %v42_v10 = vsel %vm38_vm0, %v419_v7, 256  ;;  %v43_v11 = vsel %vm39_vm1, %v422_v8, 256 }
  0x7f   :  { %vm46_vm2 = vcmp.lt.s32.totalorder %v42_v10, %v43_v11 }
  0x80   :  { %v47_v12 = vsel %vm46_vm2, %v42_v10, %v43_v11 }
  0x81   :  { %v49_v13 = vshra.s32 %v47_v12, 16  ;;  %v48_v21 = vand.u32 65535, %v47_v12 }
  0x83   :  { %v51_v14 = vcvt.s32.f32 %v49_v13  ;;  %v50_v23 = vcvt.s32.f32 %v48_v21 }
  0x84   :  { %v37_v15 = vpop.xlane.xlu0 %36 }
  0x85   :  { %vm40_vm3 = vcmp.eq.f32.partialorder %v413_v3, %v37_v15  ;;  %vm41_vm4 = vcmp.eq.f32.partialorder %v415_v4, %v37_v15  ;;  %52 = vmin.xlane.f32.xlu1 %v51_v14 }
  0x86   :  { %v44_v16 = vsel %vm40_vm3, %v419_v7, 256  ;;  %v45_v17 = vsel %vm41_vm4, %v422_v8, 256 }
  0x87   :  { %vm62_vm5 = vcmp.lt.s32.totalorder %v44_v16, %v45_v17 }
  0x88   :  { %v63_v18 = vsel %vm62_vm5, %v44_v16, %v45_v17 }
  0x89   :  { %v65_v19 = vshra.s32 %v63_v18, 16  ;;  %v64_v25 = vand.u32 65535, %v63_v18 }
  0x8b   :  { %v67_v20 = vcvt.s32.f32 %v65_v19  ;;  %v66_v27 = vcvt.s32.f32 %v64_v25 }
  0x8d   :  { %68 = vmin.xlane.f32.xlu1 %v67_v20 }
  0xf8   :  { %v53_v22 = vpop.xlane.xlu1 %52 }
  0xf9   :  { %vm54_vm6 = vcmp.eq.f32.partialorder %v51_v14, %v53_v22  ;;  %v59_v29 = vcvt.f32.s32 %v53_v22 }
  0xfa   :  { %v55_v24 = vsel %vm54_vm6, %v50_v23, inf }
  0xfb   :  { %56 = vmin.xlane.f32.xlu2 %v55_v24  ;;  %v60_v31 = vshll.u32 %v59_v29, 16 }
 0x100   :  { %v69_v26 = vpop.xlane.xlu1 %68 }
 0x101   :  { %vm70_vm7 = vcmp.eq.f32.partialorder %v67_v20, %v69_v26  ;;  %v75_v34 = vcvt.f32.s32 %v69_v26 }
 0x102   :  { %v71_v28 = vsel %vm70_vm7, %v66_v27, inf }
 0x103   :  { %72 = vmin.xlane.f32.xlu2 %v71_v28  ;;  %v76_v40 = vshll.u32 %v75_v34, 16 }
 0x16e   :  { %v57_v30 = vpop.xlane.xlu2 %56 }
 0x16f   :  { %v58_v32 = vcvt.f32.s32 %v57_v30 }
 0x171   :  { %v61_v33 = vadd.s32 %v60_v31, %v58_v32 }
 0x173   :  { %vm78_vm8 = vcmp.eq.s32.totalorder %v419_v7, %v61_v33  ;;  %vm79_vm9 = vcmp.eq.s32.totalorder %v422_v8, %v61_v33 }
 0x174   :  { %vm435_vm11 = vmxor %vm78_vm8, %vm388_vm10 }
 0x175   :  { %vm440_vm12 = vmxor %vm79_vm9, %vm388_vm10  ;;  %v86_v37 = vsel %vm435_vm11, %v407_v0, -inf }
 0x176   :  { %v73_v38 = vpop.xlane.xlu2 %72  ;;  %v87_v39 = vsel %vm440_vm12, %v409_v1, -inf }
 0x177   :  { %v74_v41 = vcvt.f32.s32 %v73_v38  ;;  %v90_v42 = vmax.f32 %v86_v37, %v87_v39 }
 0x179   :  { %v77_v43 = vadd.s32 %v76_v40, %v74_v41  ;;  %91 = vmax.xlane.f32.xlu0 %v90_v42 }
 0x17b   :  { %vm80_vm13 = vcmp.eq.s32.totalorder %v419_v7, %v77_v43  ;;  %vm81_vm14 = vcmp.eq.s32.totalorder %v422_v8, %v77_v43 }
 0x17c   :  { %vm453_vm15 = vmxor %vm80_vm13, %vm388_vm10 }
 0x17d   :  { %vm458_vm0 = vmxor %vm81_vm14, %vm388_vm10  ;;  %v88_v46 = vsel %vm453_vm15, %v413_v3, -inf }
 0x17e   :  { %v89_v47 = vsel %vm458_vm0, %v415_v4, -inf }
 0x17f   :  { %v93_v48 = vmax.f32 %v88_v46, %v89_v47 }
 0x181   :  { %94 = vmax.xlane.f32.xlu1 %v93_v48 }
 0x1ec   :  { %v92_v49 = vpop.xlane.xlu0 %91 }
 0x1ed   :  { %vm96_vm1 = vcmp.eq.f32.partialorder %v86_v37, %v92_v49  ;;  %vm97_vm2 = vcmp.eq.f32.partialorder %v87_v39, %v92_v49 }
 0x1ee   :  { %vm100_vm3 = vmand %vm435_vm11, %vm96_vm1 }
 0x1ef   :  { %vm101_vm4 = vmand %vm440_vm12, %vm97_vm2  ;;  %v104_v50 = vsel %vm100_vm3, %v419_v7, 256 }
 0x1f0   :  { %v105_v51 = vsel %vm101_vm4, %v422_v8, 256 }
 0x1f1   :  { %vm108_vm5 = vcmp.lt.s32.totalorder %v104_v50, %v105_v51 }
 0x1f2   :  { %v109_v52 = vsel %vm108_vm5, %v104_v50, %v105_v51 }
 0x1f3   :  { %v111_v53 = vshra.s32 %v109_v52, 16  ;;  %v110_v61 = vand.u32 65535, %v109_v52 }
 0x1f4   :  { %v95_v54 = vpop.xlane.xlu1 %94 }
 0x1f5   :  { %vm98_vm6 = vcmp.eq.f32.partialorder %v88_v46, %v95_v54  ;;  %vm99_vm7 = vcmp.eq.f32.partialorder %v89_v47, %v95_v54  ;;  %v113_v55 = vcvt.s32.f32 %v111_v53  ;;  %v112_v63 = vcvt.s32.f32 %v110_v61 }
 0x1f6   :  { %vm102_vm8 = vmand %vm453_vm15, %vm98_vm6 }
 0x1f7   :  { %vm103_vm9 = vmand %vm458_vm0, %vm99_vm7  ;;  %v106_v56 = vsel %vm102_vm8, %v419_v7, 256  ;;  %114 = vmin.xlane.f32.xlu2 %v113_v55 }
 0x1f8   :  { %v107_v57 = vsel %vm103_vm9, %v422_v8, 256 }
 0x1f9   :  { %vm124_vm13 = vcmp.lt.s32.totalorder %v106_v56, %v107_v57 }
 0x1fa   :  { %v125_v58 = vsel %vm124_vm13, %v106_v56, %v107_v57 }
 0x1fb   :  { %v127_v59 = vshra.s32 %v125_v58, 16  ;;  %v126_v5 = vand.u32 65535, %v125_v58 }
 0x1fd   :  { %v129_v60 = vcvt.s32.f32 %v127_v59  ;;  %v128_v9 = vcvt.s32.f32 %v126_v5 }
 0x1ff   :  { %130 = vmin.xlane.f32.xlu0 %v129_v60 }
 0x26a   :  { %v115_v62 = vpop.xlane.xlu2 %114 }
 0x26b   :  { %vm116_vm14 = vcmp.eq.f32.partialorder %v113_v55, %v115_v62  ;;  %v121_v11 = vcvt.f32.s32 %v115_v62 }
 0x26c   :  { %v117_v2 = vsel %vm116_vm14, %v112_v63, inf }
 0x26d   :  { %118 = vmin.xlane.f32.xlu1 %v117_v2  ;;  %v122_v13 = vshll.u32 %v121_v11, 16 }
 0x272   :  { %v131_v6 = vpop.xlane.xlu0 %130 }
 0x273   :  { %vm132_vm1 = vcmp.eq.f32.partialorder %v129_v60, %v131_v6  ;;  %v137_v16 = vcvt.f32.s32 %v131_v6 }
 0x274   :  { %v133_v10 = vsel %vm132_vm1, %v128_v9, inf }
 0x275   :  { %134 = vmin.xlane.f32.xlu2 %v133_v10  ;;  %v138_v19 = vshll.u32 %v137_v16, 16 }
 0x2e0   :  { %v119_v12 = vpop.xlane.xlu1 %118 }
 0x2e1   :  { %v120_v14 = vcvt.f32.s32 %v119_v12 }
 0x2e3   :  { %v123_v15 = vadd.s32 %v122_v13, %v120_v14 }
 0x2e5   :  { %vm140_vm2 = vcmp.eq.s32.totalorder %v419_v7, %v123_v15  ;;  %vm141_vm3 = vcmp.eq.s32.totalorder %v422_v8, %v123_v15 }
 0x2e6   :  { %vm144_vm4 = vmxor %vm140_vm2, %vm388_vm10 }
 0x2e7   :  { %vm145_vm5 = vmxor %vm141_vm3, %vm388_vm10 }
 0x2e8   :  { %v135_v17 = vpop.xlane.xlu2 %134  ;;  %vm486_vm6 = vmand %vm435_vm11, %vm144_vm4 }
 0x2e9   :  { %v136_v20 = vcvt.f32.s32 %v135_v17  ;;  %vm492_vm7 = vmand %vm440_vm12, %vm145_vm5  ;;  %v152_v22 = vsel %vm486_vm6, %v407_v0, -inf }
 0x2ea   :  { %v153_v23 = vsel %vm492_vm7, %v409_v1, -inf }
 0x2eb   :  { %v139_v24 = vadd.s32 %v138_v19, %v136_v20  ;;  %v156_v25 = vmax.f32 %v152_v22, %v153_v23 }
 0x2ed   :  { %vm142_vm11 = vcmp.eq.s32.totalorder %v419_v7, %v139_v24  ;;  %vm143_vm8 = vcmp.eq.s32.totalorder %v422_v8, %v139_v24  ;;  %157 = vmax.xlane.f32.xlu0 %v156_v25 }
 0x2ee   :  { %vm146_vm12 = vmxor %vm142_vm11, %vm388_vm10 }
 0x2ef   :  { %vm147_vm9 = vmxor %vm143_vm8, %vm388_vm10 }
 0x2f0   :  { %vm508_vm13 = vmand %vm453_vm15, %vm146_vm12 }
 0x2f1   :  { %vm514_vm14 = vmand %vm458_vm0, %vm147_vm9  ;;  %v154_v28 = vsel %vm508_vm13, %v413_v3, -inf }
 0x2f2   :  { %v155_v29 = vsel %vm514_vm14, %v415_v4, -inf }
 0x2f3   :  { %v159_v30 = vmax.f32 %v154_v28, %v155_v29 }
 0x2f5   :  { %160 = vmax.xlane.f32.xlu1 %v159_v30 }
 0x360   :  { %v158_v31 = vpop.xlane.xlu0 %157 }
 0x361   :  { %vm162_vm15 = vcmp.eq.f32.partialorder %v152_v22, %v158_v31  ;;  %vm163_vm1 = vcmp.eq.f32.partialorder %v153_v23, %v158_v31 }
 0x362   :  { %vm166_vm2 = vmand %vm486_vm6, %vm162_vm15 }
 0x363   :  { %vm167_vm0 = vmand %vm492_vm7, %vm163_vm1  ;;  %v170_v32 = vsel %vm166_vm2, %v419_v7, 256 }
 0x364   :  { %v171_v33 = vsel %vm167_vm0, %v422_v8, 256 }
 0x365   :  { %vm174_vm3 = vcmp.lt.s32.totalorder %v170_v32, %v171_v33 }
 0x366   :  { %v175_v34 = vsel %vm174_vm3, %v170_v32, %v171_v33 }
 0x367   :  { %v177_v35 = vshra.s32 %v175_v34, 16  ;;  %v176_v43 = vand.u32 65535, %v175_v34 }
 0x368   :  { %v161_v36 = vpop.xlane.xlu1 %160 }
 0x369   :  { %vm164_vm4 = vcmp.eq.f32.partialorder %v154_v28, %v161_v36  ;;  %vm165_vm5 = vcmp.eq.f32.partialorder %v155_v29, %v161_v36  ;;  %v179_v37 = vcvt.s32.f32 %v177_v35  ;;  %v178_v45 = vcvt.s32.f32 %v176_v43 }
 0x36a   :  { %vm168_vm11 = vmand %vm508_vm13, %vm164_vm4 }
 0x36b   :  { %vm169_vm8 = vmand %vm514_vm14, %vm165_vm5  ;;  %v172_v38 = vsel %vm168_vm11, %v419_v7, 256  ;;  %180 = vmin.xlane.f32.xlu2 %v179_v37 }
 0x36c   :  { %v173_v39 = vsel %vm169_vm8, %v422_v8, 256 }
 0x36d   :  { %vm190_vm12 = vcmp.lt.s32.totalorder %v172_v38, %v173_v39 }
 0x36e   :  { %v191_v40 = vsel %vm190_vm12, %v172_v38, %v173_v39 }
 0x36f   :  { %v193_v41 = vshra.s32 %v191_v40, 16  ;;  %v192_v47 = vand.u32 65535, %v191_v40 }
 0x371   :  { %v195_v42 = vcvt.s32.f32 %v193_v41  ;;  %v194_v49 = vcvt.s32.f32 %v192_v47 }
 0x373   :  { %196 = vmin.xlane.f32.xlu0 %v195_v42 }
 0x3de   :  { %v181_v44 = vpop.xlane.xlu2 %180 }
 0x3df   :  { %vm182_vm9 = vcmp.eq.f32.partialorder %v179_v37, %v181_v44  ;;  %v187_v51 = vcvt.f32.s32 %v181_v44 }
 0x3e0   :  { %v183_v46 = vsel %vm182_vm9, %v178_v45, inf }
 0x3e1   :  { %184 = vmin.xlane.f32.xlu1 %v183_v46  ;;  %v188_v53 = vshll.u32 %v187_v51, 16 }
 0x3e6   :  { %v197_v48 = vpop.xlane.xlu0 %196 }
 0x3e7   :  { %vm198_vm15 = vcmp.eq.f32.partialorder %v195_v42, %v197_v48  ;;  %v203_v56 = vcvt.f32.s32 %v197_v48  ;;  %v389_v42 = vmov 0.0  }
 0x3e8   :  { %v199_v50 = vsel %vm198_vm15, %v194_v49, inf }
 0x3e9   :  { %200 = vmin.xlane.f32.xlu2 %v199_v50  ;;  %v204_v59 = vshll.u32 %v203_v56, 16 }
 0x454   :  { %v185_v52 = vpop.xlane.xlu1 %184 }
 0x455   :  { %v186_v54 = vcvt.f32.s32 %v185_v52 }
 0x457   :  { %v189_v55 = vadd.s32 %v188_v53, %v186_v54 }
 0x459   :  { %vm206_vm1 = vcmp.eq.s32.totalorder %v419_v7, %v189_v55  ;;  %vm207_vm2 = vcmp.eq.s32.totalorder %v422_v8, %v189_v55 }
 0x45a   :  { %vm210_vm0 = vmxor %vm206_vm1, %vm388_vm10 }
 0x45b   :  { %vm211_vm3 = vmxor %vm207_vm2, %vm388_vm10 }
 0x45c   :  { %v201_v57 = vpop.xlane.xlu2 %200  ;;  %vm542_vm4 = vmand %vm486_vm6, %vm210_vm0 }
 0x45d   :  { %v202_v60 = vcvt.f32.s32 %v201_v57  ;;  %vm548_vm5 = vmand %vm492_vm7, %vm211_vm3  ;;  %v218_v62 = vsel %vm542_vm4, %v407_v0, -inf }
 0x45e   :  { %v219_v63 = vsel %vm548_vm5, %v409_v1, -inf }
 0x45f   :  { %v205_v2 = vadd.s32 %v204_v59, %v202_v60  ;;  %v222_v5 = vmax.f32 %v218_v62, %v219_v63 }
 0x461   :  { %vm208_vm6 = vcmp.eq.s32.totalorder %v419_v7, %v205_v2  ;;  %vm209_vm11 = vcmp.eq.s32.totalorder %v422_v8, %v205_v2  ;;  %223 = vmax.xlane.f32.xlu0 %v222_v5 }
 0x462   :  { %vm212_vm7 = vmxor %vm208_vm6, %vm388_vm10 }
 0x463   :  { %vm213_vm8 = vmxor %vm209_vm11, %vm388_vm10 }
 0x464   :  { %vm564_vm12 = vmand %vm508_vm13, %vm212_vm7 }
 0x465   :  { %vm570_vm9 = vmand %vm514_vm14, %vm213_vm8  ;;  %v220_v10 = vsel %vm564_vm12, %v413_v3, -inf }
 0x466   :  { %v221_v11 = vsel %vm570_vm9, %v415_v4, -inf }
 0x467   :  { %v225_v12 = vmax.f32 %v220_v10, %v221_v11 }
 0x469   :  { %226 = vmax.xlane.f32.xlu1 %v225_v12 }
 0x4d4   :  { %v224_v13 = vpop.xlane.xlu0 %223 }
 0x4d5   :  { %vm228_vm13 = vcmp.eq.f32.partialorder %v218_v62, %v224_v13  ;;  %vm229_vm15 = vcmp.eq.f32.partialorder %v219_v63, %v224_v13 }
 0x4d6   :  { %vm232_vm1 = vmand %vm542_vm4, %vm228_vm13 }
 0x4d7   :  { %vm233_vm14 = vmand %vm548_vm5, %vm229_vm15  ;;  %v236_v14 = vsel %vm232_vm1, %v419_v7, 256 }
 0x4d8   :  { %v237_v15 = vsel %vm233_vm14, %v422_v8, 256 }
 0x4d9   :  { %vm240_vm2 = vcmp.lt.s32.totalorder %v236_v14, %v237_v15 }
 0x4da   :  { %v241_v16 = vsel %vm240_vm2, %v236_v14, %v237_v15 }
 0x4db   :  { %v243_v17 = vshra.s32 %v241_v16, 16  ;;  %v242_v25 = vand.u32 65535, %v241_v16 }
 0x4dc   :  { %v227_v18 = vpop.xlane.xlu1 %226 }
 0x4dd   :  { %vm230_vm0 = vcmp.eq.f32.partialorder %v220_v10, %v227_v18  ;;  %vm231_vm3 = vcmp.eq.f32.partialorder %v221_v11, %v227_v18  ;;  %v245_v19 = vcvt.s32.f32 %v243_v17  ;;  %v244_v27 = vcvt.s32.f32 %v242_v25 }
 0x4de   :  { %vm234_vm6 = vmand %vm564_vm12, %vm230_vm0 }
 0x4df   :  { %vm235_vm11 = vmand %vm570_vm9, %vm231_vm3  ;;  %v238_v20 = vsel %vm234_vm6, %v419_v7, 256  ;;  %246 = vmin.xlane.f32.xlu2 %v245_v19 }
 0x4e0   :  { %v239_v21 = vsel %vm235_vm11, %v422_v8, 256 }
 0x4e1   :  { %vm256_vm7 = vcmp.lt.s32.totalorder %v238_v20, %v239_v21 }
 0x4e2   :  { %v257_v22 = vsel %vm256_vm7, %v238_v20, %v239_v21 }
 0x4e3   :  { %v259_v23 = vshra.s32 %v257_v22, 16  ;;  %v258_v29 = vand.u32 65535, %v257_v22 }
 0x4e5   :  { %v261_v24 = vcvt.s32.f32 %v259_v23  ;;  %v260_v31 = vcvt.s32.f32 %v258_v29 }
 0x4e7   :  { %262 = vmin.xlane.f32.xlu0 %v261_v24 }
 0x552   :  { %v247_v26 = vpop.xlane.xlu2 %246 }
 0x553   :  { %vm248_vm8 = vcmp.eq.f32.partialorder %v245_v19, %v247_v26  ;;  %v253_v33 = vcvt.f32.s32 %v247_v26 }
 0x554   :  { %v249_v28 = vsel %vm248_vm8, %v244_v27, inf }
 0x555   :  { %250 = vmin.xlane.f32.xlu1 %v249_v28  ;;  %v254_v35 = vshll.u32 %v253_v33, 16 }
 0x55a   :  { %v263_v30 = vpop.xlane.xlu0 %262 }
 0x55b   :  { %vm264_vm13 = vcmp.eq.f32.partialorder %v261_v24, %v263_v30  ;;  %v269_v38 = vcvt.f32.s32 %v263_v30 }
 0x55c   :  { %v265_v32 = vsel %vm264_vm13, %v260_v31, inf }
 0x55d   :  { %266 = vmin.xlane.f32.xlu2 %v265_v32  ;;  %v270_v40 = vshll.u32 %v269_v38, 16 }
 0x5c8   :  { %v251_v34 = vpop.xlane.xlu1 %250 }
 0x5c9   :  { %v252_v36 = vcvt.f32.s32 %v251_v34 }
 0x5cb   :  { %v255_v37 = vadd.s32 %v254_v35, %v252_v36 }
 0x5cd   :  { %vm272_vm15 = vcmp.eq.s32.totalorder %v419_v7, %v255_v37  ;;  %vm273_vm1 = vcmp.eq.s32.totalorder %v422_v8, %v255_v37 }
 0x5ce   :  { %vm276_vm14 = vmxor %vm272_vm15, %vm388_vm10 }
 0x5cf   :  { %vm277_vm2 = vmxor %vm273_vm1, %vm388_vm10 }
 0x5d0   :  { %vm280_vm0 = vmand %vm542_vm4, %vm276_vm14  ;;  %v267_v39 = vpop.xlane.xlu2 %266 }
 0x5d1   :  { %vm281_vm3 = vmand %vm548_vm5, %vm277_vm2  ;;  %v268_v41 = vcvt.f32.s32 %v267_v39 }
 0x5d2   :  { %vm284_vm6 = vmxor %vm280_vm0, %vm388_vm10 }
 0x5d3   :  { %vm285_vm11 = vmxor %vm281_vm3, %vm388_vm10  ;;  %v323_v43 = vsel %vm284_vm6, 1.0, %v389_v42  ;;  %v271_v44 = vadd.s32 %v270_v40, %v268_v41 }
 0x5d4   :  { %v324_v45 = vsel %vm285_vm11, 1.0, %v389_v42  ;;  %v296_v46 = vmul.f32 %v323_v43, %v407_v0 }
 0x5d5   :  { %v297_v47 = vmul.f32 %v324_v45, %v409_v1  ;;  %vm274_vm4 = vcmp.eq.s32.totalorder %v419_v7, %v271_v44  ;;  %vm275_vm7 = vcmp.eq.s32.totalorder %v422_v8, %v271_v44 }
 0x5d6   :  { %300 = vst [vmem:[#allocation5] sm:$0xff] %v296_v46  ;;  %vm278_vm5 = vmxor %vm274_vm4, %vm388_vm10 }
 0x5d7   :  { %301 = vst [vmem:[#allocation5 + $0x8] sm:$0xff] %v297_v47  ;;  %vm279_vm8 = vmxor %vm275_vm7, %vm388_vm10 }
 0x5d8   :  { %vm282_vm13 = vmand %vm564_vm12, %vm278_vm5 }
 0x5d9   :  { %vm283_vm15 = vmand %vm570_vm9, %vm279_vm8 }
 0x5da   :  { %vm286_vm1 = vmxor %vm282_vm13, %vm388_vm10 }
 0x5db   :  { %vm287_vm14 = vmxor %vm283_vm15, %vm388_vm10  ;;  %v325_v0 = vsel %vm286_vm1, 1.0, %v389_v42 }
 0x5dc   :  { %v326_v1 = vsel %vm287_vm14, 1.0, %v389_v42  ;;  %v298_v7 = vmul.f32 %v325_v0, %v413_v3 }
 0x5dd   :  { %v299_v8 = vmul.f32 %v326_v1, %v415_v4 }
 0x5de   :  { %302 = vst [vmem:[#allocation5 + $0x10] sm:$0xff] %v298_v7 }
 0x5df   :  { %303 = vst [vmem:[#allocation5 + $0x18] sm:$0xff] %v299_v8 }
 0x5e0   :  { %316 = dma.vmem_to_hbm [thread:$0]  %s309_s13, 512, %s311_s16, [#allocation4], %s386_s11, %s386_s11, %s387_s12  }
 0x5e1   :  { %383 = dma.done.wait [#allocation4], 512  }
 0x5e2   :  { %384 = vsyncadd [#allocation4], 4294966784 }
 0x5e3   :  { %321 = vsyncpa [#allocation3], 1 }
 0x5e4   :  { %322 = vsyncpa [#allocation4], 1 }

</bundles_post_ra>
